<compile_context>
chip_gen: v7x
topology: tpu7x:2x2x1
jax: 0.10.0
libtpu: 0.0.40
codegen_flags: <defaults>
</compile_context>

<pallas_src>
import functools

import jax
import jax.numpy as jnp
from jax.experimental import pallas as pl
from jax.experimental.pallas import tpu as pltpu


def _lipswish(x):
    # LipSwish activation used by the SDE-GAN MLP: 0.909 * x * sigmoid(x)
    return 0.909 * x * jax.nn.sigmoid(x)


def _round_up(x, m):
    return ((x + m - 1) // m) * m


def _make_kernel(n_linears, widths, activation, use_tanh):
    """widths[i] = output width of linear i (static python ints)."""
    act = _lipswish if activation == "lipswish" else jax.nn.relu

    def kernel(t_ref, h_ref, w0h_ref, small_ref, *rest):
        o_ref = rest[-1]
        w_refs = rest[:-1]                      # bf16 weights of linears 1..n-1
        t = t_ref[pl.program_id(1)]             # per-step scalar time (f32, SMEM)
        mlp = widths[0]

        # Layer 0:  th @ W0 + b0  ==  h @ W0[1:] + t * W0[0] + b0
        # bf16 operands -> native MXU path, f32 accumulation.
        h_blk = h_ref[...]
        if h_blk.dtype != jnp.bfloat16:
            h_blk = h_blk.astype(jnp.bfloat16)
        x = jnp.dot(h_blk, w0h_ref[...], preferred_element_type=jnp.float32)
        x = x + t * small_ref[0:1, :mlp] + small_ref[1:2, :mlp]
        if n_linears > 1:
            x = act(x)                          # f32 elementwise (VPU/EUP)

        for i, w_ref in enumerate(w_refs):      # linears 1 .. n_linears-1
            width = widths[i + 1]
            b = small_ref[2 + i:3 + i, :width]
            x = jnp.dot(x.astype(jnp.bfloat16), w_ref[...],
                        preferred_element_type=jnp.float32) + b
            if i + 1 < n_linears - 1:           # no activation after last linear
                x = act(x)
        if use_tanh:
            x = jnp.tanh(x)
        o_ref[...] = x.astype(o_ref.dtype)

    return kernel


def init_params(key, data_size, hidden_size, mlp_size, num_layers,
                dtype=jnp.float32):
    """Deterministic synthetic params mimicking nn.Linear's uniform init.

    Weights are stored (in_features, out_features); biases are (1, out)."""
    in_size = 1 + hidden_size
    out_size = hidden_size * (1 + data_size)
    dims = [in_size] + [mlp_size] * num_layers + [out_size]
    params = []
    for i in range(len(dims) - 1):
        key, kw, kb = jax.random.split(key, 3)
        bound = 1.0 / (dims[i] ** 0.5)
        w = jax.random.uniform(kw, (dims[i], dims[i + 1]), dtype, -bound, bound)
        b = jax.random.uniform(kb, (1, dims[i + 1]), dtype, -bound, bound)
        params.append((w, b))
    return params


def pack_params(params):
    """One-time host-side packing:

      w0_h       : (hidden, mlp)  bf16   -- W0 without its first (t-) row
      small_pack : (1+n_linears, max_out) f32
                     row 0 = W0[0]   (t weights, width mlp)
                     row 1 = b0      (width mlp)
                     row 1+i = b_i   (i = 1..n_linears-1)
      ws         : tuple of bf16 weights for linears 1..n_linears-1

    TODO(synk): if the downstream consumer contracts the output against dX,
    reorder the last layer's columns here (data-major) so its slab is
    lane-dense in `hidden`, or better, fuse that contraction into the kernel.
    """
    n_linears = len(params)
    widths = [w.shape[1] for w, _ in params]
    out_max = max(widths)

    w0, b0 = params[0]
    w0_h = w0[1:, :].astype(jnp.bfloat16)

    def _pad(row, width):
        return jnp.pad(row, ((0, 0), (0, out_max - width)))

    rows = [_pad(w0[0:1, :], widths[0]), _pad(b0, widths[0])]
    for i in range(1, n_linears):
        rows.append(_pad(params[i][1], widths[i]))
    small_pack = jnp.concatenate(rows, axis=0).astype(jnp.float32)

    ws = tuple(w.astype(jnp.bfloat16) for w, _ in params[1:])
    return {"w0_h": w0_h, "small": small_pack, "ws": ws}


@functools.partial(
    jax.jit,
    static_argnames=("data_size", "hidden_size", "activation", "tanh",
                     "block_rows", "out_dtype"))
def neural_cde_func(t, h, packed, *, data_size, hidden_size,
                    activation="lipswish", tanh=True, block_rows=512,
                    out_dtype=None):
    """NeuralCDEFunc forward.

    t: ()   , h: (B, hidden)     -> (B, hidden, 1 + data)
    t: (S,) , h: (S, B, hidden)  -> (S, B, hidden, 1 + data)  (fused evaluations)
    """
    w0_h, small, ws = packed["w0_h"], packed["small"], packed["ws"]

    squeeze_steps = (jnp.ndim(t) == 0)
    t_arr = jnp.reshape(t, (-1,)).astype(jnp.float32)          # (S,)
    S = t_arr.shape[0]
    h3 = h if h.ndim == 3 else h[None]                         # (S, B, hidden)
    assert h3.shape[0] == S and h3.shape[2] == hidden_size
    B, hid = h3.shape[1], h3.shape[2]

    n_linears = 1 + len(ws)
    widths = (w0_h.shape[1],) + tuple(w.shape[1] for w in ws)
    out_size = widths[-1]
    assert out_size == hidden_size * (1 + data_size)

    out_dtype = h3.dtype if out_dtype is None else jnp.dtype(out_dtype)

    # Batch tiling: single block for tiny batches; otherwise >=2 tiles so the
    # "parallel" batch axis can shard across both v7x TensorCores, capped at
    # block_rows (512 ~ 85% of HBM roofline for mem-bound tiles).
    if B <= 8:
        tb = B
    else:
        tb = min(block_rows, _round_up(pl.cdiv(B, 2), 8))
    n_tiles = pl.cdiv(B, tb)
    grid = (n_tiles, S)

    # ---- VMEM budget (v7x: 64 MiB physical / 32 MiB scoped default) --------
    weight_bytes = int(w0_h.size * w0_h.dtype.itemsize
                       + small.size * small.dtype.itemsize
                       + sum(w.size * w.dtype.itemsize for w in ws))
    # Weights have a constant index_map; once they are big, a second pipeline
    # buffer is pure VMEM waste -> single-buffer them.
    single_buffer_weights = weight_bytes > (8 << 20)
    weight_mode = pl.Buffered(1) if single_buffer_weights else None
    act_bytes = 2 * tb * (hid * h3.dtype.itemsize + out_size * out_dtype.itemsize)
    interm_bytes = 4 * tb * max(widths) * 4            # f32 intermediates headroom
    vmem_needed = ((1 if single_buffer_weights else 2) * weight_bytes
                   + act_bytes + interm_bytes)
    vmem_limit = int(min(max(2 * vmem_needed, 32 << 20), 64 << 20))

    def _weight_spec(shape):
        if weight_mode is None:
            return pl.BlockSpec(shape, lambda i, s: (0, 0))
        return pl.BlockSpec(shape, lambda i, s: (0, 0), pipeline_mode=weight_mode)

    in_specs = [
        # per-step scalar time, resident in SMEM
        pl.BlockSpec((S,), lambda i, s: (0,),
                     memory_space=pltpu.MemorySpace.SMEM),
        # activations: tiled over the batch, one step at a time
        pl.BlockSpec((None, tb, hid), lambda i, s: (s, i, 0)),
        # weights / packed biases: VMEM-resident across the whole grid
        _weight_spec(w0_h.shape),
        _weight_spec(small.shape),
    ] + [_weight_spec(w.shape) for w in ws]

    # Advisory cost so XLA can overlap this small kernel with neighbours.
    dims_in = (hid,) + widths[:-1]
    flops = 2 * S * B * sum(a * b for a, b in zip(dims_in, widths))
    transcendentals = S * B * (sum(widths[:-1]) + (out_size if tanh else 0))
    bytes_accessed = int(h3.size * h3.dtype.itemsize
                         + S * B * out_size * out_dtype.itemsize + weight_bytes)
    cost = pl.CostEstimate(flops=int(flops),
                           transcendentals=int(transcendentals),
                           bytes_accessed=bytes_accessed)

    kernel = _make_kernel(n_linears, widths, activation, tanh)

    out = pl.pallas_call(
        kernel,
        out_shape=jax.ShapeDtypeStruct((S, B, out_size), out_dtype),
        grid=grid,
        in_specs=in_specs,
        out_specs=pl.BlockSpec((None, tb, out_size), lambda i, s: (s, i, 0)),
        compiler_params=pltpu.CompilerParams(
            dimension_semantics=("parallel", "arbitrary"),
            vmem_limit_bytes=vmem_limit),
        cost_estimate=cost,
    )(t_arr, h3, w0_h, small, *ws)

    out = out.reshape(S, B, hidden_size, 1 + data_size)
    return out[0] if squeeze_steps else out


def _reference(t, h, params, data_size, hidden_size, activation, tanh,
               mirror_kernel):
    """Pure-JAX reference.

    mirror_kernel=False: faithful f32 port of the PyTorch module.
    mirror_kernel=True : replicates the kernel's math exactly (bf16 matmul
    operands, f32 accumulation, t-path kept in f32).
    """
    act = _lipswish if activation == "lipswish" else jax.nn.relu
    B = h.shape[0]
    n = len(params)
    t = jnp.reshape(t, ()).astype(jnp.float32)

    if not mirror_kernel:
        hf = h.astype(jnp.float32)
        t_col = jnp.full((B, 1), t, jnp.float32)
        x = jnp.concatenate([t_col, hf], axis=1)
        for i, (w, b) in enumerate(params):
            x = x @ w + b
            if i < n - 1:
                x = act(x)
    else:
        def q(a):
            return a.astype(jnp.bfloat16).astype(jnp.float32)
        w0, b0 = params[0]
        x = q(h) @ q(w0[1:]) + t * w0[0:1] + b0
        if n > 1:
            x = act(x)
        for i in range(1, n):
            w, b = params[i]
            x = q(x) @ q(w) + b
            if i < n - 1:
                x = act(x)
    if tanh:
        x = jnp.tanh(x)
    return x.reshape(B, hidden_size, 1 + data_size)


if __name__ == "__main__":
    data_size, hidden_size, mlp_size, num_layers = 4, 32, 32, 2
    activation, tanh = "lipswish", True
    B = 2

    key = jax.random.PRNGKey(0)
    kp, kt, kh, kts, khs = jax.random.split(key, 5)
    params = init_params(kp, data_size, hidden_size, mlp_size, num_layers)
    packed = pack_params(params)                 # one-time host-side packing
    t = jax.random.uniform(kt, (), jnp.float32)
    h = jax.random.normal(kh, (B, hidden_size), jnp.float32)

    cfg = dict(data_size=data_size, hidden_size=hidden_size,
               activation=activation, tanh=tanh)

    # 1) Plain module forward (scalar t, f32 h / f32 out).
    out = jax.block_until_ready(neural_cde_func(t, h, packed, **cfg))
    assert out.shape == (B, hidden_size, 1 + data_size), out.shape
    ref_mirror = _reference(t, h, params, data_size, hidden_size, activation,
                            tanh, mirror_kernel=True)
    ref_f32 = _reference(t, h, params, data_size, hidden_size, activation,
                         tanh, mirror_kernel=False)
    assert jnp.allclose(out, ref_mirror, atol=2e-3, rtol=2e-3), \
        "mismatch vs kernel-precision reference"
    assert jnp.allclose(out, ref_f32, atol=5e-2, rtol=5e-2), \
        "mismatch vs f32 reference"

    # 2) bf16 state + bf16 output (halved input DMA / output HBM writes,
    #    lane-dense stores on v5e).
    out_bf16 = jax.block_until_ready(
        neural_cde_func(t, h.astype(jnp.bfloat16), packed,
                        out_dtype=jnp.bfloat16, **cfg))
    assert out_bf16.shape == (B, hidden_size, 1 + data_size)
    assert out_bf16.dtype == jnp.bfloat16
    assert jnp.allclose(out_bf16.astype(jnp.float32), ref_f32,
                        atol=5e-2, rtol=5e-2), "mismatch in bf16 path"

    # 3) Fused multi-evaluation: S (t, h) pairs in a single pallas_call with
    #    the weights DMA'd once and kept VMEM-resident across all evaluations.
    S = 3
    ts = jax.random.uniform(kts, (S,), jnp.float32)
    hs = jax.random.normal(khs, (S, B, hidden_size), jnp.float32)
    outs = jax.block_until_ready(neural_cde_func(ts, hs, packed, **cfg))
    assert outs.shape == (S, B, hidden_size, 1 + data_size), outs.shape
    refs = jnp.stack([_reference(ts[i], hs[i], params, data_size, hidden_size,
                                 activation, tanh, mirror_kernel=True)
                      for i in range(S)])
    assert jnp.allclose(outs, refs, atol=2e-3, rtol=2e-3), \
        "mismatch in fused multi-eval path"

    print("KERNEL_OK")
</pallas_src>

<mosaic_0001>
module attributes {stable_mosaic.version = 11 : i64} {
  func.func @kernel(%arg0: i32, %arg1: i32, %arg2: memref<1xf32, #tpu.memory_space<smem>>, %arg3: memref<1x2x32xf32, #tpu.memory_space<vmem>>, %arg4: memref<32x32xbf16, #tpu.memory_space<vmem>>, %arg5: memref<4x160xf32, #tpu.memory_space<vmem>>, %arg6: memref<32x32xbf16, #tpu.memory_space<vmem>>, %arg7: memref<32x160xbf16, #tpu.memory_space<vmem>>, %arg8: memref<1x2x160xf32, #tpu.memory_space<vmem>>) attributes {dimension_semantics = [#tpu.dimension_semantics<parallel>, #tpu.dimension_semantics<arbitrary>], iteration_bounds = array<i64: 1, 1>, scalar_prefetch = 0 : i64, scratch_operands = 0 : i64, tpu.core_type = #tpu.core_type<tc>, window_params = [{transform_indices = @transform_0, window_bounds = array<i64: 1>}, {transform_indices = @transform_1, window_bounds = array<i64: 1, 2, 32>}, {pipeline_mode = #tpu.pipeline_mode<synchronous>, transform_indices = @transform_2, window_bounds = array<i64: 32, 32>}, {pipeline_mode = #tpu.pipeline_mode<synchronous>, transform_indices = @transform_3, window_bounds = array<i64: 4, 160>}, {pipeline_mode = #tpu.pipeline_mode<synchronous>, transform_indices = @transform_4, window_bounds = array<i64: 32, 32>}, {pipeline_mode = #tpu.pipeline_mode<synchronous>, transform_indices = @transform_5, window_bounds = array<i64: 32, 160>}, {transform_indices = @transform_6, window_bounds = array<i64: 1, 2, 160>}]} {
    %0 = arith.index_cast %arg1 : i32 to index
    %1 = memref.load %arg2[%0] : memref<1xf32, #tpu.memory_space<smem>>
    %c0 = arith.constant 0 : index
    %c0_0 = arith.constant 0 : index
    %c0_1 = arith.constant 0 : index
    %2 = vector.load %arg3[%c0, %c0_0, %c0_1] : memref<1x2x32xf32, #tpu.memory_space<vmem>>, vector<1x2x32xf32>
    %3 = vector.shape_cast %2 : vector<1x2x32xf32> to vector<2x32xf32>
    %4 = arith.truncf %3 : vector<2x32xf32> to vector<2x32xbf16>
    %c0_2 = arith.constant 0 : index
    %c0_3 = arith.constant 0 : index
    %5 = vector.load %arg4[%c0_2, %c0_3] : memref<32x32xbf16, #tpu.memory_space<vmem>>, vector<32x32xbf16>
    %cst = arith.constant dense<0.000000e+00> : vector<2x32xf32>
    %6 = tpu.matmul %4, %5, %cst {dimension_numbers = #tpu.dot_dimension_numbers<[1], [0], [0], [1], [0, 0, 1, 1], [], []>} : vector<2x32xbf16>, vector<32x32xbf16>, vector<2x32xf32> -> vector<2x32xf32>
    %c0_4 = arith.constant 0 : index
    %c0_5 = arith.constant 0 : index
    %7 = vector.load %arg5[%c0_4, %c0_5] : memref<4x160xf32, #tpu.memory_space<vmem>>, vector<1x32xf32>
    %8 = vector.broadcast %1 : f32 to vector<1x32xf32>
    %9 = arith.mulf %8, %7 : vector<1x32xf32>
    %10 = vector.broadcast %9 : vector<1x32xf32> to vector<2x32xf32>
    %11 = arith.addf %6, %10 : vector<2x32xf32>
    %c1 = arith.constant 1 : index
    %c0_6 = arith.constant 0 : index
    %12 = vector.load %arg5[%c1, %c0_6] : memref<4x160xf32, #tpu.memory_space<vmem>>, vector<1x32xf32>
    %13 = vector.broadcast %12 : vector<1x32xf32> to vector<2x32xf32>
    %14 = arith.addf %11, %13 : vector<2x32xf32>
    %cst_7 = arith.constant 0.908999979 : f32
    %15 = vector.broadcast %cst_7 : f32 to vector<2x32xf32>
    %16 = arith.mulf %15, %14 : vector<2x32xf32>
    %17 = arith.negf %14 : vector<2x32xf32>
    %18 = math.exp %17 : vector<2x32xf32>
    %cst_8 = arith.constant 1.000000e+00 : f32
    %19 = vector.broadcast %cst_8 : f32 to vector<2x32xf32>
    %20 = arith.addf %19, %18 : vector<2x32xf32>
    %21 = arith.divf %19, %20 : vector<2x32xf32>
    %22 = arith.mulf %16, %21 : vector<2x32xf32>
    %c2 = arith.constant 2 : index
    %c0_9 = arith.constant 0 : index
    %23 = vector.load %arg5[%c2, %c0_9] : memref<4x160xf32, #tpu.memory_space<vmem>>, vector<1x32xf32>
    %24 = arith.truncf %22 : vector<2x32xf32> to vector<2x32xbf16>
    %c0_10 = arith.constant 0 : index
    %c0_11 = arith.constant 0 : index
    %25 = vector.load %arg6[%c0_10, %c0_11] : memref<32x32xbf16, #tpu.memory_space<vmem>>, vector<32x32xbf16>
    %cst_12 = arith.constant dense<0.000000e+00> : vector<2x32xf32>
    %26 = tpu.matmul %24, %25, %cst_12 {dimension_numbers = #tpu.dot_dimension_numbers<[1], [0], [0], [1], [0, 0, 1, 1], [], []>} : vector<2x32xbf16>, vector<32x32xbf16>, vector<2x32xf32> -> vector<2x32xf32>
    %27 = vector.broadcast %23 : vector<1x32xf32> to vector<2x32xf32>
    %28 = arith.addf %26, %27 : vector<2x32xf32>
    %cst_13 = arith.constant 0.908999979 : f32
    %29 = vector.broadcast %cst_13 : f32 to vector<2x32xf32>
    %30 = arith.mulf %29, %28 : vector<2x32xf32>
    %31 = arith.negf %28 : vector<2x32xf32>
    %32 = math.exp %31 : vector<2x32xf32>
    %cst_14 = arith.constant 1.000000e+00 : f32
    %33 = vector.broadcast %cst_14 : f32 to vector<2x32xf32>
    %34 = arith.addf %33, %32 : vector<2x32xf32>
    %35 = arith.divf %33, %34 : vector<2x32xf32>
    %36 = arith.mulf %30, %35 : vector<2x32xf32>
    %c3 = arith.constant 3 : index
    %c0_15 = arith.constant 0 : index
    %37 = vector.load %arg5[%c3, %c0_15] : memref<4x160xf32, #tpu.memory_space<vmem>>, vector<1x160xf32>
    %38 = arith.truncf %36 : vector<2x32xf32> to vector<2x32xbf16>
    %c0_16 = arith.constant 0 : index
    %c0_17 = arith.constant 0 : index
    %39 = vector.load %arg7[%c0_16, %c0_17] : memref<32x160xbf16, #tpu.memory_space<vmem>>, vector<32x160xbf16>
    %cst_18 = arith.constant dense<0.000000e+00> : vector<2x160xf32>
    %40 = tpu.matmul %38, %39, %cst_18 {dimension_numbers = #tpu.dot_dimension_numbers<[1], [0], [0], [1], [0, 0, 1, 1], [], []>} : vector<2x32xbf16>, vector<32x160xbf16>, vector<2x160xf32> -> vector<2x160xf32>
    %41 = vector.broadcast %37 : vector<1x160xf32> to vector<2x160xf32>
    %42 = arith.addf %40, %41 : vector<2x160xf32>
    %43 = math.tanh %42 : vector<2x160xf32>
    %c0_19 = arith.constant 0 : index
    %c0_20 = arith.constant 0 : index
    %c0_21 = arith.constant 0 : index
    %44 = vector.load %arg8[%c0_19, %c0_20, %c0_21] : memref<1x2x160xf32, #tpu.memory_space<vmem>>, vector<1x2x160xf32>
    %45 = vector.shape_cast %44 : vector<1x2x160xf32> to vector<2x160xf32>
    %46 = vector.shape_cast %43 : vector<2x160xf32> to vector<1x2x160xf32>
    tpu.vector_store %arg8[%c0_19, %c0_20, %c0_21], %46 {strides = array<i32>} : memref<1x2x160xf32, #tpu.memory_space<vmem>>, vector<1x2x160xf32>,
    return
  }
  func.func @transform_0(%arg0: i32, %arg1: i32) -> i32 {
    %c0_i32 = arith.constant 0 : i32
    %c0_i32_0 = arith.constant 0 : i32
    return %c0_i32 : i32
  }
  func.func @transform_1(%arg0: i32, %arg1: i32) -> (i32, i32, i32) {
    %c0_i32 = arith.constant 0 : i32
    %c0_i32_0 = arith.constant 0 : i32
    return %arg1, %arg0, %c0_i32 : i32, i32, i32
  }
  func.func @transform_2(%arg0: i32, %arg1: i32) -> (i32, i32) {
    %c0_i32 = arith.constant 0 : i32
    %c0_i32_0 = arith.constant 0 : i32
    %c0_i32_1 = arith.constant 0 : i32
    return %c0_i32, %c0_i32_0 : i32, i32
  }
  func.func @transform_3(%arg0: i32, %arg1: i32) -> (i32, i32) {
    %c0_i32 = arith.constant 0 : i32
    %c0_i32_0 = arith.constant 0 : i32
    %c0_i32_1 = arith.constant 0 : i32
    return %c0_i32, %c0_i32_0 : i32, i32
  }
  func.func @transform_4(%arg0: i32, %arg1: i32) -> (i32, i32) {
    %c0_i32 = arith.constant 0 : i32
    %c0_i32_0 = arith.constant 0 : i32
    %c0_i32_1 = arith.constant 0 : i32
    return %c0_i32, %c0_i32_0 : i32, i32
  }
  func.func @transform_5(%arg0: i32, %arg1: i32) -> (i32, i32) {
    %c0_i32 = arith.constant 0 : i32
    %c0_i32_0 = arith.constant 0 : i32
    %c0_i32_1 = arith.constant 0 : i32
    return %c0_i32, %c0_i32_0 : i32, i32
  }
  func.func @transform_6(%arg0: i32, %arg1: i32) -> (i32, i32, i32) {
    %c0_i32 = arith.constant 0 : i32
    %c0_i32_0 = arith.constant 0 : i32
    return %arg1, %arg0, %c0_i32 : i32, i32, i32
  }
}

</mosaic_0001>

<bundles_post_ra>
// kernel: neural_cde_func.1
= control target key start
LH: loop header
LB: loop body
LE: loop exit
PB: predicated region body
PF: predicated region fallthrough
CT: control target
= control target key end

     0   :  { %12 = vsyncpa [#allocation4], 0  ;;  %s571_s0 = inlined_call_operand.<no memory space> [shape: f32[1], index: 0, kind: input, shape index: {}]   ;;  %s572_s1 = inlined_call_operand.vmem [shape: f32[1,2,32], index: 1, kind: input, shape index: {}]   ;;  %s573_s2 = inlined_call_operand.vmem [shape: bf16[32,32], index: 2, kind: input, shape index: {}]   ;;  %s574_s3 = inlined_call_operand.hbm [shape: f32[4,160], index: 3, kind: input, shape index: {}]   ;;  %s575_s4 = inlined_call_operand.hbm [shape: bf16[32,32], index: 4, kind: input, shape index: {}]   ;;  %s576_s5 = inlined_call_operand.hbm [shape: bf16[32,160], index: 5, kind: input, shape index: {}]   ;;  %s577_s6 = inlined_call_operand.vmem [shape: f32[1,2,160], index: 6, kind: output, shape index: {}]  }
   0x1   :  { %13 = vsyncpa [#allocation6], 0  ;;  %s466_s21 = smov [#allocation5]   ;;  %s396_s25 = scalar_lea.hbm %s575_s4, 256 }
   0x2   :  { %s35_s22 = sshll.u32 %s466_s21, 4  ;;  %p397_p0 = scmp.ne.s32.totalorder %s575_s4, %s396_s25  ;;  %s36_s22 = int_to_ptr.vmem [resolvable:$true] %s35_s22 }
   0x3   :  { %p400_p1 = scmp.lt.u32.totalorder %s396_s25, %s575_s4 }
   0x5   :  { %p402_p2 = pnand %p400_p1, %p397_p0 }
   0x7   :  { %405 = shalt.err (!%p402_p2)
}
   0x8   :  { %s406_s30 = scalar_lea.vmem %s36_s22, 256  ;;  %p411_p4 = scmp.lt.s32.totalorder %s36_s22, %s36_s22 }
   0x9   :  { %p407_p3 = scmp.ne.s32.totalorder %s36_s22, %s406_s30  ;;  %p412_p5 = scmp.lt.s32.totalorder %s406_s30, %s406_s30 }
   0xb   :  { %p413_p6 = por %p412_p5, %p411_p4 }
   0xd   :  { %p414_p7 = pnand %p413_p6, %p407_p3 }
   0xf   :  { %417 = shalt.err (!%p414_p7)
}
  0x10   :  { %s467_s7 = smov 64   ;;  %s468_s8 = smov 4  }
  0x11   :  { %41 = dma.hbm_to_vmem [thread:$0]  %s575_s4, 256, %s36_s22, [#allocation6], %s467_s7, %s467_s7, %s468_s8  }
  0x12   :  { %s469_s11 = smov [#allocation3]   ;;  %s470_s13 = smov [#allocation7]  }
  0x13   :  { %s26_s12 = sshll.u32 %s469_s11, 4  ;;  %s47_s14 = sshll.u32 %s470_s13, 4  ;;  %s27_s12 = int_to_ptr.vmem [resolvable:$true] %s26_s12  ;;  %s48_s14 = int_to_ptr.vmem [resolvable:$true] %s47_s14 }
  0x14   :  { %s418_s17 = scalar_lea.hbm %s574_s3, 128 }
  0x15   :  { %p419_p8 = scmp.ne.s32.totalorder %s574_s3, %s418_s17  ;;  %p422_p9 = scmp.lt.u32.totalorder %s418_s17, %s574_s3 }
  0x17   :  { %p424_p10 = pnand %p422_p9, %p419_p8 }
  0x19   :  { %427 = shalt.err (!%p424_p10)
}
  0x1a   :  { %s428_s4 = scalar_lea.vmem %s27_s12, 128  ;;  %p433_p12 = scmp.lt.s32.totalorder %s27_s12, %s27_s12 }
  0x1b   :  { %p429_p11 = scmp.ne.s32.totalorder %s27_s12, %s428_s4  ;;  %p434_p13 = scmp.lt.s32.totalorder %s428_s4, %s428_s4 }
  0x1d   :  { %p435_p0 = por %p434_p13, %p433_p12 }
  0x1f   :  { %p436_p1 = pnand %p435_p0, %p429_p11 }
  0x21   :  { %439 = shalt.err (!%p436_p1)
}
  0x22   :  { %29 = dma.hbm_to_vmem [thread:$0]  %s574_s3, 128, %s27_s12, [#allocation4]  }
  0x23   :  { %s440_s26 = scalar_lea.hbm %s576_s5, 512 }
  0x24   :  { %p441_p2 = scmp.ne.s32.totalorder %s576_s5, %s440_s26  ;;  %p444_p3 = scmp.lt.u32.totalorder %s440_s26, %s576_s5 }
  0x26   :  { %p446_p4 = pnand %p444_p3, %p441_p2 }
  0x28   :  { %449 = shalt.err (!%p446_p4)
}
  0x29   :  { %s450_s7 = scalar_lea.vmem %s48_s14, 512  ;;  %p455_p6 = scmp.lt.s32.totalorder %s48_s14, %s48_s14 }
  0x2a   :  { %p451_p5 = scmp.ne.s32.totalorder %s48_s14, %s450_s7  ;;  %p456_p7 = scmp.lt.s32.totalorder %s450_s7, %s450_s7 }
  0x2c   :  { %p457_p8 = por %p456_p7, %p455_p6 }
  0x2e   :  { %p458_p9 = pnand %p457_p8, %p451_p5 }
  0x30   :  { %461 = shalt.err (!%p458_p9)
}
  0x31   :  { %s471_s3 = smov 128   ;;  %s472_s8 = smov 8  }
  0x32   :  { %53 = dma.hbm_to_vmem [thread:$0]  %s576_s5, 512, %s48_s14, [#allocation6], %s471_s3, %s471_s3, %s472_s8  }
  0x33   :  { %462 = dma.done.wait [#allocation4], 128  }
  0x34   :  { %463 = vsyncadd [#allocation4], 4294967168 }
  0x35   :  { %464 = dma.done.wait [#allocation6], 768  }
  0x36   :  { %465 = vsyncadd [#allocation6], 4294966528  ;;  %v473_v0 = vmov 0.0   ;;  %vm474_vm0 = vmmov 0   ;;  %v374_v1 = vld [vmem:[%s573_s2] sm:$0xff]   ;;  %v375_v2 = vld [vmem:[%s573_s2 + $0x8] sm:$0xff]   ;;  %v74_v7 = vlaneseq  ;;  %v72_v10 = vstv %s571_s0 }
  0x37   :  { %347 = vmatprep.subr.bf16.mxu0 %v473_v0  ;;  %351 = vmatprep.mubr.msk.bf16.mxu0 %vm474_vm0, %v473_v0  ;;  %v65_v3 = vld [vmem:[%s572_s1] sm:$0x3]  ;;  %vm90_vm1 = vcmask 261120   ;;  %v376_v5 = vld [vmem:[#allocation5] sm:$0xff]   ;;  %v377_v6 = vld [vmem:[#allocation5 + $0x8] sm:$0xff]   ;;  %v475_v32 = vmov 0  }
  0x38   :  { %355 = vmatprep.subr.bf16.mxu1 %v473_v0  ;;  %359 = vmatprep.mubr.msk.bf16.mxu1 %vm474_vm0, %v473_v0  ;;  %v66_v4 = vpack.c.bf16 %v65_v3, %v65_v3  ;;  %v558_v8 = vshrl.u32 %v74_v7, 7  ;;  %v71_v9 = vld [vmem:[#allocation3] sm:$0x1]  ;;  %v329_v15 = vld [vmem:[#allocation3 + $0x1] ss:$0 sm:$0xff]  ;;  %vm316_vm2 = vcmask 1041408  }
  0x39   :  { %348 = vmatpush3.bf16.msra.mxu0 %v374_v1  ;;  %356 = vmatpush3.bf16.msra.mxu1 %v376_v5  ;;  %v73_v11 = vmul.f32 %v72_v10, %v71_v9  ;;  %v380_v28 = vld [vmem:[#allocation7 + $0x4] ss:$8 sps:$4 sm:$0xff]   ;;  %v378_v29 = vld [vmem:[#allocation7] ss:$8 sps:$4 sm:$0xff]   ;;  %v383_v30 = vld [vmem:[#allocation7 + $0x14] ss:$8 sps:$4 sm:$0xff]  }
  0x3a   :  { %349 = vmatprep.subr.bf16.mxu0 %v473_v0  ;;  %357 = vmatprep.subr.bf16.mxu1 %v473_v0  ;;  %v76_v12 = vsub.s32 0, %v558_v8  ;;  %v381_v31 = vld [vmem:[#allocation7 + $0x10] ss:$8 sps:$4 sm:$0xff]   ;;  %v331_v33 = vld [vmem:[#allocation3 + $0x2] ss:$0 sm:$0xff]  ;;  %v235_v47 = vsub.s32 1, %v558_v8 }
  0x3b   :  { %v222_v46 = vld [vmem:[#allocation3 + $0x3] ss:$4 sm:$0x3]  ;;  %v476_v56 = vmov 1983009808   ;;  %vm317_vm3 = vcmask 257026  }
  0x3c   :  { %v77_v13 = vrot.slane %v73_v11, %v76_v12  ;;  %v232_v48 = vrot.slane %v222_v46, %v76_v12  ;;  %v236_v49 = vrot.slane %v222_v46, %v235_v47  ;;  %v309_v57 = vunpack.c.l.s4 %v476_v56  ;;  %vm318_vm4 = vmor %vm317_vm3, %vm316_vm2 }
  0x3d   :  { %350 = vmatpush3.bf16.msra.mxu0 %v375_v2  ;;  %358 = vmatpush3.bf16.msra.mxu1 %v377_v6 }
  0x3e   :  { %262 = vmatprep.subr.bf16.mxu0 %v380_v28  ;;  %v310_v58 = vunpack.c.0.s8 %v309_v57 }
  0x40   :  { %352 = vmatmul.mubr.msk.bf16.vlgmr.msra.gmra.mrb[0].mxu0 %vm90_vm1, %v66_v4  ;;  %v313_v60 = vsub.s32 %v310_v58, %v558_v8 }
  0x41   :  { %263 = vmatpush1.bf16.msra.mxu0 %v378_v29  ;;  %294 = vmatprep.mubr.bf16.mxu0 %v475_v32 }
  0x42   :  { %264 = vmatprep.subr.bf16.mxu0 %v383_v30 }
  0x45   :  { %265 = vmatpush1.bf16.msra.mxu0 %v381_v31 }
 0x113   :  { %v128_v14 = vpop.f32.mrb[0].mxu0 }
 0x114   :  { %v129_v16 = vadd.f32 %v128_v14, %v77_v13  ;;  %v353_v17 = vpop.f32.mrb[1].mxu0 }
 0x115   :  { %v131_v18 = vpop.f32.mrb[2].mxu0 }
 0x116   :  { %v139_v19 = vadd.f32 %v329_v15, %v129_v16  ;;  %v354_v20 = vpop.f32.mrb[3].mxu0 }
 0x118   :  { %v330_v21 = vmul.f32 -1.442695, %v139_v19  ;;  %v140_v24 = vmul.f32 0.909, %v139_v19 }
 0x11a   :  { %384 = vpow2.f32 %v330_v21 }
 0x124   :  { %v385_v22 = vpop.eup %384 }
 0x125   :  { %v144_v23 = vadd.f32 1.0, %v385_v22 }
 0x127   :  { %386 = vrcp.f32 %v144_v23 }
 0x131   :  { %v387_v25 = vpop.eup %386 }
 0x132   :  { %v147_v26 = vmul.f32 %v387_v25, %v140_v24 }
 0x134   :  { %v149_v27 = vpack.c.bf16 %v147_v26, %v147_v26 }
 0x136   :  { %360 = vmatmul.mubr.msk.bf16.vlgmr.msra.gmra.mrb[0].mxu1 %vm90_vm1, %v149_v27 }
 0x209   :  { %v207_v34 = vpop.f32.mrb[0].mxu1 }
 0x20a   :  { %v208_v35 = vadd.f32 %v331_v33, %v207_v34  ;;  %v361_v36 = vpop.f32.mrb[1].mxu1 }
 0x20b   :  { %v210_v37 = vpop.f32.mrb[2].mxu1 }
 0x20c   :  { %v335_v38 = vmul.f32 -1.442695, %v208_v35  ;;  %v362_v39 = vpop.f32.mrb[3].mxu1  ;;  %v213_v42 = vmul.f32 0.909, %v208_v35 }
 0x20e   :  { %388 = vpow2.f32 %v335_v38 }
 0x218   :  { %v389_v40 = vpop.eup %388 }
 0x219   :  { %v217_v41 = vadd.f32 1.0, %v389_v40 }
 0x21b   :  { %390 = vrcp.f32 %v217_v41 }
 0x225   :  { %v391_v43 = vpop.eup %390 }
 0x226   :  { %v220_v44 = vmul.f32 %v391_v43, %v213_v42 }
 0x228   :  { %v223_v45 = vpack.c.bf16 %v220_v44, %v220_v44 }
 0x22a   :  { %340 = vmatmul.mubr.msk.bf16.vlgmr.msra.gmra.mrb[4].mxu0 %vm90_vm1, %v223_v45 }
 0x2fd   :  { %v296_v50 = vpop.f32.mrb[4].mxu0 }
 0x2fe   :  { %v297_v51 = vadd.f32 %v296_v50, %v232_v48  ;;  %v298_v52 = vpop.f32.mrb[5].mxu0 }
 0x2ff   :  { %v299_v53 = vadd.f32 %v298_v52, %v236_v49  ;;  %v300_v54 = vpop.f32.mrb[6].mxu0 }
 0x300   :  { %392 = vtanh.f32 %v297_v51  ;;  %v301_v55 = vpop.f32.mrb[7].mxu0 }
 0x301   :  { %394 = vtanh.f32 %v299_v53 }
 0x30a   :  { %v393_v59 = vpop.eup %392 }
 0x30b   :  { %v395_v61 = vpop.eup %394 }
 0x30c   :  { %v307_v62 = vcombine.low %v393_v59, %v395_v61 }
 0x30e   :  { %v314_v63 = vrot.slane %v307_v62, %v313_v60 }
 0x310   :  { %319 = vst.msk [vmem:[%s577_s6] sm:$0xf] %vm318_vm4, %v314_v63 }
 0x311   :  { %324 = vsyncpa [#allocation4], 1 }
 0x312   :  { %325 = vsyncpa [#allocation6], 1 }

</bundles_post_ra>
